<compile_context>
chip_gen: v7x
topology: tpu7x:2x2x1
jax: 0.10.0
libtpu: 0.0.40
codegen_flags: <defaults>
</compile_context>

<pallas_src>
import math
import functools

import jax
import jax.numpy as jnp
from jax import lax
from jax.experimental import pallas as pl
from jax.experimental.pallas import tpu as pltpu

# (B, K) x (K, O) -> (B, O): standard contraction, no transpose of either operand.
_DN = (((1,), (0,)), ((), ()))


def _round_up(x, m):
    return (x + m - 1) // m * m


def _vmem_limit_bytes():
    try:
        cap = int(pltpu.get_tpu_info().vmem_capacity_bytes)
    except Exception:
        cap = 64 << 20  # conservative default: v7x per-TensorCore VMEM
    return int(min((cap * 3) // 4, 96 << 20))


def _choose_out_tile(O_pad):
    if O_pad <= 128:
        return O_pad
    # Prefer >= 2 output tiles so the "parallel" O axis can use both v7x TCs.
    for cand in (256, 128):
        if O_pad % cand == 0 and O_pad // cand >= 2:
            return cand
    return 128


def _footprint_bytes(B_pad, To, Tk, wbytes, training):
    n_w = 2 if training else 1
    w = n_w * To * Tk * wbytes * 2          # weight tiles (mu [+ sigma]), double buffered
    xb = B_pad * Tk * 4 * 2                 # x block
    ob = B_pad * To * 4 * 2                 # output block
    rows = (Tk + 2 * To) * 4 * 2            # eps_in / eps_out / bias rows
    acc = B_pad * To * 4 if training else 0  # sigma accumulator (tiled path only)
    return w + xb + ob + rows + acc


def _select_tiles(B_pad, I_pad, O_pad, wbytes, training, budget):
    To = _choose_out_tile(O_pad)
    if _footprint_bytes(B_pad, To, I_pad, wbytes, training) <= budget:
        return To, I_pad                     # whole-K: no reduction axis at all
    n = I_pad // 128
    divisors = sorted((d for d in range(1, n + 1) if n % d == 0), reverse=True)
    for d in divisors:
        Tk = d * 128
        if _footprint_bytes(B_pad, To, Tk, wbytes, training) <= budget:
            return To, Tk
    if To > 128:
        for d in divisors:
            Tk = d * 128
            if _footprint_bytes(B_pad, 128, Tk, wbytes, training) <= budget:
                return 128, Tk
    # Note: very large batches would additionally want a B grid axis; RL batches
    # for this module are small, so we fall back to minimal tiles here.
    return 128, 128


# --------------------------------- kernels ----------------------------------

def _train_whole_k_kernel(x_ref, w_mu_ref, w_sigma_ref, eps_in_ref, eps_out_ref,
                          bias_ref, o_ref, *, mxu_dtype):
    x = x_ref[...]                               # (B, K) f32
    xs = x * eps_in_ref[...]                     # keep elementwise mul in f32 (v5e VPU)
    if mxu_dtype is not None:                    # cast only the MXU operands
        x = x.astype(mxu_dtype)
        xs = xs.astype(mxu_dtype)
    mu = lax.dot_general(x, w_mu_ref[...], _DN, preferred_element_type=jnp.float32)
    sig = lax.dot_general(xs, w_sigma_ref[...], _DN, preferred_element_type=jnp.float32)
    o_ref[...] = (mu + sig * eps_out_ref[...] + bias_ref[...]).astype(o_ref.dtype)


def _eval_whole_k_kernel(x_ref, w_mu_ref, bias_ref, o_ref, *, mxu_dtype):
    x = x_ref[...]
    if mxu_dtype is not None:
        x = x.astype(mxu_dtype)
    mu = lax.dot_general(x, w_mu_ref[...], _DN, preferred_element_type=jnp.float32)
    o_ref[...] = (mu + bias_ref[...]).astype(o_ref.dtype)


def _train_tiled_kernel(x_ref, w_mu_ref, w_sigma_ref, eps_in_ref, eps_out_ref,
                        bias_ref, o_ref, sig_acc, *, mxu_dtype):
    k = pl.program_id(1)

    @pl.when(k == 0)
    def _():
        o_ref[...] = jnp.zeros_like(o_ref)
        sig_acc[...] = jnp.zeros_like(sig_acc)

    x = x_ref[...]
    xs = x * eps_in_ref[...]
    if mxu_dtype is not None:
        x = x.astype(mxu_dtype)
        xs = xs.astype(mxu_dtype)

    # mu part accumulates directly into the VMEM-resident f32 output block;
    # sigma part into its own accumulator, eps_out applied once at finalize.
    o_ref[...] += lax.dot_general(x, w_mu_ref[...], _DN,
                                  preferred_element_type=jnp.float32)
    sig_acc[...] += lax.dot_general(xs, w_sigma_ref[...], _DN,
                                    preferred_element_type=jnp.float32)

    @pl.when(k == pl.num_programs(1) - 1)
    def _():
        o_ref[...] += sig_acc[...] * eps_out_ref[...] + bias_ref[...]


def _eval_tiled_kernel(x_ref, w_mu_ref, bias_ref, o_ref, *, mxu_dtype):
    k = pl.program_id(1)

    @pl.when(k == 0)
    def _():
        o_ref[...] = jnp.zeros_like(o_ref)

    x = x_ref[...]
    if mxu_dtype is not None:
        x = x.astype(mxu_dtype)
    o_ref[...] += lax.dot_general(x, w_mu_ref[...], _DN,
                                  preferred_element_type=jnp.float32)

    @pl.when(k == pl.num_programs(1) - 1)
    def _():
        o_ref[...] += bias_ref[...]


# ----------------------- one-time parameter preparation ---------------------

def prepare_noisy_linear(params, *, weight_dtype=jnp.float32):
    """One-time (per reset_noise / parameter update) preparation.

    Pads to 128-multiples, transposes weights to (I_pad, O_pad) so the kernel
    uses a standard ((1,),(0,)) contraction (no implicit tile transpose), casts
    weights once to `weight_dtype` (e.g. bf16 halves streamed HBM bytes), and
    folds the O(O) bias noise.  Nothing here runs in the per-forward hot path.
    """
    O, I = params["weight_mu"].shape
    I_pad = _round_up(I, 128)
    O_pad = _round_up(O, 128)

    def w_t(w):
        w = jnp.pad(w, ((0, O_pad - O), (0, I_pad - I)))
        return jnp.asarray(w.T, dtype=weight_dtype)          # (I_pad, O_pad)

    def row(v, n_pad):
        v = v.reshape(1, -1).astype(jnp.float32)
        return jnp.pad(v, ((0, 0), (0, n_pad - v.shape[1])))

    bias_train = params["bias_mu"] + params["bias_sigma"] * params["bias_epsilon"]
    return {
        "in_features": I, "out_features": O,
        "I_pad": I_pad, "O_pad": O_pad,
        "weight_dtype": jnp.dtype(weight_dtype),
        "w_mu_t": w_t(params["weight_mu"]),
        "w_sigma_t": w_t(params["weight_sigma"]),
        "eps_in_row": row(params["weight_eps_in"], I_pad),
        "eps_out_row": row(params["weight_eps_out"], O_pad),
        "bias_train_row": row(bias_train, O_pad),
        "bias_eval_row": row(params["bias_mu"], O_pad),
    }


# --------------------------------- forward ----------------------------------

def noisy_linear_forward(x, prep, *, training=True):
    """Pallas forward for NoisyLinear.  x: (B, in_features) f32."""
    B, I = x.shape
    assert I == prep["in_features"]
    I_pad, O_pad, O = prep["I_pad"], prep["O_pad"], prep["out_features"]
    wdtype = prep["weight_dtype"]
    wbytes = wdtype.itemsize
    mxu_dtype = None if wdtype == jnp.dtype(jnp.float32) else wdtype

    # bf16 MXU operands pack 2 rows per sublane -> round B up to 16 in that case.
    sub = 8 if mxu_dtype is None else 16
    B_pad = _round_up(B, sub)
    if B_pad != B or I_pad != I:
        x_p = jnp.pad(x, ((0, B_pad - B), (0, I_pad - I)))
    else:
        x_p = x

    vmem_limit = _vmem_limit_bytes()
    budget = vmem_limit // 3
    To, Tk = _select_tiles(B_pad, I_pad, O_pad, wbytes, training, budget)
    whole_k = (Tk == I_pad)

    out_shape = jax.ShapeDtypeStruct((B_pad, O_pad), jnp.float32)
    scratch = []

    if whole_k:
        grid = (O_pad // To,)
        x_spec = pl.BlockSpec((B_pad, I_pad), lambda o: (0, 0))
        w_spec = pl.BlockSpec((I_pad, To), lambda o: (0, o))
        row_k = pl.BlockSpec((1, I_pad), lambda o: (0, 0))
        row_o = pl.BlockSpec((1, To), lambda o: (0, o))
        out_spec = pl.BlockSpec((B_pad, To), lambda o: (0, o))
        semantics = ("parallel",)
        if training:
            kern = functools.partial(_train_whole_k_kernel, mxu_dtype=mxu_dtype)
            in_specs = [x_spec, w_spec, w_spec, row_k, row_o, row_o]
            args = (x_p, prep["w_mu_t"], prep["w_sigma_t"], prep["eps_in_row"],
                    prep["eps_out_row"], prep["bias_train_row"])
        else:
            kern = functools.partial(_eval_whole_k_kernel, mxu_dtype=mxu_dtype)
            in_specs = [x_spec, w_spec, row_o]
            args = (x_p, prep["w_mu_t"], prep["bias_eval_row"])
    else:
        grid = (O_pad // To, I_pad // Tk)
        x_spec = pl.BlockSpec((B_pad, Tk), lambda o, k: (0, k))
        w_spec = pl.BlockSpec((Tk, To), lambda o, k: (k, o))
        row_k = pl.BlockSpec((1, Tk), lambda o, k: (0, k))
        row_o = pl.BlockSpec((1, To), lambda o, k: (0, o))
        out_spec = pl.BlockSpec((B_pad, To), lambda o, k: (0, o))
        semantics = ("parallel", "arbitrary")
        if training:
            kern = functools.partial(_train_tiled_kernel, mxu_dtype=mxu_dtype)
            in_specs = [x_spec, w_spec, w_spec, row_k, row_o, row_o]
            args = (x_p, prep["w_mu_t"], prep["w_sigma_t"], prep["eps_in_row"],
                    prep["eps_out_row"], prep["bias_train_row"])
            scratch = [pltpu.VMEM((B_pad, To), jnp.float32)]
        else:
            kern = functools.partial(_eval_tiled_kernel, mxu_dtype=mxu_dtype)
            in_specs = [x_spec, w_spec, row_o]
            args = (x_p, prep["w_mu_t"], prep["bias_eval_row"])

    y_p = pl.pallas_call(
        kern,
        out_shape=out_shape,
        grid_spec=pltpu.PrefetchScalarGridSpec(
            num_scalar_prefetch=0,
            grid=grid,
            in_specs=in_specs,
            out_specs=out_spec,
            scratch_shapes=scratch),
        compiler_params=pltpu.CompilerParams(
            dimension_semantics=semantics,
            vmem_limit_bytes=vmem_limit),
    )(*args)

    return y_p[:B, :O]


# -------------- parameter / noise initialization (plain JAX glue) -----------

def _scale_noise(key, size):
    x = jax.random.normal(key, (size,), dtype=jnp.float32)
    return jnp.sign(x) * jnp.sqrt(jnp.abs(x))


def init_noisy_linear(key, in_features, out_features, std_init=0.4):
    k_wmu, k_bmu, k_ein, k_eout, k_beps = jax.random.split(key, 5)
    mu_range = 1.0 / math.sqrt(in_features)

    weight_mu = jax.random.uniform(
        k_wmu, (out_features, in_features), jnp.float32, -mu_range, mu_range)
    weight_sigma = jnp.full((out_features, in_features),
                            std_init / math.sqrt(in_features), jnp.float32)
    bias_mu = jax.random.uniform(
        k_bmu, (out_features,), jnp.float32, -mu_range, mu_range)
    bias_sigma = jnp.full((out_features,),
                          std_init / math.sqrt(out_features), jnp.float32)

    # reset_noise(): weight_epsilon = eps_out ⊗ eps_in (kept factorized).
    eps_in = _scale_noise(k_ein, in_features)
    eps_out = _scale_noise(k_eout, out_features)
    bias_epsilon = _scale_noise(k_beps, out_features)

    return {
        "weight_mu": weight_mu,
        "weight_sigma": weight_sigma,
        "weight_eps_in": eps_in,
        "weight_eps_out": eps_out,
        "bias_mu": bias_mu,
        "bias_sigma": bias_sigma,
        "bias_epsilon": bias_epsilon,
    }


if __name__ == "__main__":
    key = jax.random.PRNGKey(0)
    k_params, k_x = jax.random.split(key)

    batch, in_features, out_features = 4, 32, 64

    params = init_noisy_linear(k_params, in_features, out_features, std_init=0.4)
    x = jax.random.normal(k_x, (batch, in_features), dtype=jnp.float32)

    # Pure-JAX reference (materializes weight_epsilon exactly like the module).
    weight_epsilon = jnp.outer(params["weight_eps_out"], params["weight_eps_in"])
    w_ref = params["weight_mu"] + params["weight_sigma"] * weight_epsilon
    b_ref = params["bias_mu"] + params["bias_sigma"] * params["bias_epsilon"]
    y_train_ref = x @ w_ref.T + b_ref
    y_eval_ref = x @ params["weight_mu"].T + params["bias_mu"]

    # Exact f32 weight streaming.
    prep_f32 = prepare_noisy_linear(params, weight_dtype=jnp.float32)
    y_train = jax.block_until_ready(noisy_linear_forward(x, prep_f32, training=True))
    assert jnp.allclose(y_train, y_train_ref, atol=1e-4, rtol=1e-4), "train mismatch"
    y_eval = jax.block_until_ready(noisy_linear_forward(x, prep_f32, training=False))
    assert jnp.allclose(y_eval, y_eval_ref, atol=1e-4, rtol=1e-4), "eval mismatch"

    # Bandwidth-optimized bf16 weight streaming (f32 MXU accumulation), relaxed tol.
    prep_bf16 = prepare_noisy_linear(params, weight_dtype=jnp.bfloat16)
    y_bf16 = jax.block_until_ready(noisy_linear_forward(x, prep_bf16, training=True))
    assert jnp.allclose(y_bf16, y_train_ref, atol=5e-2, rtol=5e-2), "bf16 mismatch"

    print("KERNEL_OK")
</pallas_src>

<mosaic_0001>
module attributes {stable_mosaic.version = 11 : i64} {
  func.func @_train_whole_k_kernel(%arg0: i32, %arg1: memref<8x128xf32, #tpu.memory_space<vmem>>, %arg2: memref<128x128xf32, #tpu.memory_space<vmem>>, %arg3: memref<128x128xf32, #tpu.memory_space<vmem>>, %arg4: memref<1x128xf32, #tpu.memory_space<vmem>>, %arg5: memref<1x128xf32, #tpu.memory_space<vmem>>, %arg6: memref<1x128xf32, #tpu.memory_space<vmem>>, %arg7: memref<8x128xf32, #tpu.memory_space<vmem>>) attributes {dimension_semantics = [#tpu.dimension_semantics<parallel>], iteration_bounds = array<i64: 1>, scalar_prefetch = 0 : i64, scratch_operands = 0 : i64, tpu.core_type = #tpu.core_type<tc>, window_params = [{pipeline_mode = #tpu.pipeline_mode<synchronous>, transform_indices = @transform_0, window_bounds = array<i64: 8, 128>}, {transform_indices = @transform_1, window_bounds = array<i64: 128, 128>}, {transform_indices = @transform_2, window_bounds = array<i64: 128, 128>}, {pipeline_mode = #tpu.pipeline_mode<synchronous>, transform_indices = @transform_3, window_bounds = array<i64: 1, 128>}, {transform_indices = @transform_4, window_bounds = array<i64: 1, 128>}, {transform_indices = @transform_5, window_bounds = array<i64: 1, 128>}, {transform_indices = @transform_6, window_bounds = array<i64: 8, 128>}]} {
    %c0 = arith.constant 0 : index
    %c0_0 = arith.constant 0 : index
    %0 = vector.load %arg1[%c0, %c0_0] : memref<8x128xf32, #tpu.memory_space<vmem>>, vector<8x128xf32>
    %c0_1 = arith.constant 0 : index
    %c0_2 = arith.constant 0 : index
    %1 = vector.load %arg4[%c0_1, %c0_2] : memref<1x128xf32, #tpu.memory_space<vmem>>, vector<1x128xf32>
    %2 = vector.broadcast %1 : vector<1x128xf32> to vector<8x128xf32>
    %3 = arith.mulf %0, %2 : vector<8x128xf32>
    %c0_3 = arith.constant 0 : index
    %c0_4 = arith.constant 0 : index
    %4 = vector.load %arg2[%c0_3, %c0_4] : memref<128x128xf32, #tpu.memory_space<vmem>>, vector<128x128xf32>
    %cst = arith.constant dense<0.000000e+00> : vector<8x128xf32>
    %5 = tpu.matmul %0, %4, %cst {dimension_numbers = #tpu.dot_dimension_numbers<[1], [0], [0], [1], [0, 0, 1, 1], [], []>} : vector<8x128xf32>, vector<128x128xf32>, vector<8x128xf32> -> vector<8x128xf32>
    %c0_5 = arith.constant 0 : index
    %c0_6 = arith.constant 0 : index
    %6 = vector.load %arg3[%c0_5, %c0_6] : memref<128x128xf32, #tpu.memory_space<vmem>>, vector<128x128xf32>
    %cst_7 = arith.constant dense<0.000000e+00> : vector<8x128xf32>
    %7 = tpu.matmul %3, %6, %cst_7 {dimension_numbers = #tpu.dot_dimension_numbers<[1], [0], [0], [1], [0, 0, 1, 1], [], []>} : vector<8x128xf32>, vector<128x128xf32>, vector<8x128xf32> -> vector<8x128xf32>
    %c0_8 = arith.constant 0 : index
    %c0_9 = arith.constant 0 : index
    %8 = vector.load %arg5[%c0_8, %c0_9] : memref<1x128xf32, #tpu.memory_space<vmem>>, vector<1x128xf32>
    %9 = vector.broadcast %8 : vector<1x128xf32> to vector<8x128xf32>
    %10 = arith.mulf %7, %9 : vector<8x128xf32>
    %11 = arith.addf %5, %10 : vector<8x128xf32>
    %c0_10 = arith.constant 0 : index
    %c0_11 = arith.constant 0 : index
    %12 = vector.load %arg6[%c0_10, %c0_11] : memref<1x128xf32, #tpu.memory_space<vmem>>, vector<1x128xf32>
    %13 = vector.broadcast %12 : vector<1x128xf32> to vector<8x128xf32>
    %14 = arith.addf %11, %13 : vector<8x128xf32>
    %c0_12 = arith.constant 0 : index
    %c0_13 = arith.constant 0 : index
    %15 = vector.load %arg7[%c0_12, %c0_13] : memref<8x128xf32, #tpu.memory_space<vmem>>, vector<8x128xf32>
    tpu.vector_store %arg7[%c0_12, %c0_13], %14 {strides = array<i32>} : memref<8x128xf32, #tpu.memory_space<vmem>>, vector<8x128xf32>,
    return
  }
  func.func @transform_0(%arg0: i32) -> (i32, i32) {
    %c0_i32 = arith.constant 0 : i32
    %c0_i32_0 = arith.constant 0 : i32
    %c0_i32_1 = arith.constant 0 : i32
    return %c0_i32, %c0_i32_0 : i32, i32
  }
  func.func @transform_1(%arg0: i32) -> (i32, i32) {
    %c0_i32 = arith.constant 0 : i32
    %c0_i32_0 = arith.constant 0 : i32
    return %c0_i32, %arg0 : i32, i32
  }
  func.func @transform_2(%arg0: i32) -> (i32, i32) {
    %c0_i32 = arith.constant 0 : i32
    %c0_i32_0 = arith.constant 0 : i32
    return %c0_i32, %arg0 : i32, i32
  }
  func.func @transform_3(%arg0: i32) -> (i32, i32) {
    %c0_i32 = arith.constant 0 : i32
    %c0_i32_0 = arith.constant 0 : i32
    %c0_i32_1 = arith.constant 0 : i32
    return %c0_i32, %c0_i32_0 : i32, i32
  }
  func.func @transform_4(%arg0: i32) -> (i32, i32) {
    %c0_i32 = arith.constant 0 : i32
    %c0_i32_0 = arith.constant 0 : i32
    return %c0_i32, %arg0 : i32, i32
  }
  func.func @transform_5(%arg0: i32) -> (i32, i32) {
    %c0_i32 = arith.constant 0 : i32
    %c0_i32_0 = arith.constant 0 : i32
    return %c0_i32, %arg0 : i32, i32
  }
  func.func @transform_6(%arg0: i32) -> (i32, i32) {
    %c0_i32 = arith.constant 0 : i32
    %c0_i32_0 = arith.constant 0 : i32
    return %c0_i32, %arg0 : i32, i32
  }
}

</mosaic_0001>

<bundles_post_ra>
// kernel: tpu_custom_call.1
= control target key start
LH: loop header
LB: loop body
LE: loop exit
PB: predicated region body
PF: predicated region fallthrough
CT: control target
= control target key end

     0   :  { %11 = vsyncpa [#allocation3], 0  ;;  %s658_s0 = inlined_call_operand.hbm [shape: f32[8,128], index: 0, kind: input, shape index: {}]   ;;  %s659_s1 = inlined_call_operand.hbm [shape: f32[128,128], index: 1, kind: input, shape index: {}]   ;;  %s660_s2 = inlined_call_operand.hbm [shape: f32[128,128], index: 2, kind: input, shape index: {}]   ;;  %s661_s3 = inlined_call_operand.vmem [shape: f32[1,128], index: 3, kind: input, shape index: {}]   ;;  %s662_s4 = inlined_call_operand.vmem [shape: f32[1,128], index: 4, kind: input, shape index: {}]   ;;  %s663_s5 = inlined_call_operand.vmem [shape: f32[1,128], index: 5, kind: input, shape index: {}]   ;;  %s664_s6 = inlined_call_operand.hbm [shape: f32[8,128], index: 6, kind: output, shape index: {}]  }
   0x1   :  { %12 = vsyncpa [#allocation6], 0 }
   0x2   :  { %13 = vsyncpa [#allocation4], 0  ;;  %s535_s21 = smov [#allocation5]   ;;  %s441_s25 = scalar_lea.hbm %s659_s1, 2048 }
   0x3   :  { %s29_s22 = sshll.u32 %s535_s21, 4  ;;  %p442_p0 = scmp.ne.s32.totalorder %s659_s1, %s441_s25  ;;  %s30_s22 = int_to_ptr.vmem [resolvable:$true] %s29_s22 }
   0x4   :  { %p445_p1 = scmp.lt.u32.totalorder %s441_s25, %s659_s1 }
   0x6   :  { %p447_p2 = pnand %p445_p1, %p442_p0 }
   0x8   :  { %450 = shalt.err (!%p447_p2)
}
   0x9   :  { %s451_s30 = scalar_lea.vmem %s30_s22, 2048  ;;  %p456_p4 = scmp.lt.s32.totalorder %s30_s22, %s30_s22 }
   0xa   :  { %p452_p3 = scmp.ne.s32.totalorder %s30_s22, %s451_s30  ;;  %p457_p5 = scmp.lt.s32.totalorder %s451_s30, %s451_s30 }
   0xc   :  { %p458_p6 = por %p457_p5, %p456_p4 }
   0xe   :  { %p459_p7 = pnand %p458_p6, %p452_p3 }
  0x10   :  { %462 = shalt.err (!%p459_p7)
}
  0x11   :  { %s536_s7 = smov 128   ;;  %s537_s8 = smov 8  }
  0x12   :  { %35 = dma.hbm_to_vmem [thread:$0]  %s659_s1, 2048, %s30_s22, [#allocation6], %s536_s7, %s536_s7, %s537_s8  }
  0x13   :  { %s538_s11 = smov [#allocation2]   ;;  %s539_s13 = smov [#allocation7]  }
  0x14   :  { %s20_s12 = sshll.u32 %s538_s11, 4  ;;  %s41_s14 = sshll.u32 %s539_s13, 4  ;;  %s21_s12 = int_to_ptr.vmem [resolvable:$true] %s20_s12  ;;  %s42_s14 = int_to_ptr.vmem [resolvable:$true] %s41_s14 }
  0x15   :  { %s463_s17 = scalar_lea.hbm %s658_s0, 128 }
  0x16   :  { %p464_p8 = scmp.ne.s32.totalorder %s658_s0, %s463_s17  ;;  %p467_p9 = scmp.lt.u32.totalorder %s463_s17, %s658_s0 }
  0x18   :  { %p469_p10 = pnand %p467_p9, %p464_p8 }
  0x1a   :  { %472 = shalt.err (!%p469_p10)
}
  0x1b   :  { %s473_s1 = scalar_lea.vmem %s21_s12, 128  ;;  %p478_p12 = scmp.lt.s32.totalorder %s21_s12, %s21_s12 }
  0x1c   :  { %p474_p11 = scmp.ne.s32.totalorder %s21_s12, %s473_s1  ;;  %p479_p13 = scmp.lt.s32.totalorder %s473_s1, %s473_s1 }
  0x1e   :  { %p480_p0 = por %p479_p13, %p478_p12 }
  0x20   :  { %p481_p1 = pnand %p480_p0, %p474_p11 }
  0x22   :  { %484 = shalt.err (!%p481_p1)
}
  0x23   :  { %23 = dma.hbm_to_vmem [thread:$0]  %s658_s0, 128, %s21_s12, [#allocation3]  }
  0x24   :  { %s485_s26 = scalar_lea.hbm %s660_s2, 2048 }
  0x25   :  { %p486_p2 = scmp.ne.s32.totalorder %s660_s2, %s485_s26  ;;  %p489_p3 = scmp.lt.u32.totalorder %s485_s26, %s660_s2 }
  0x27   :  { %p491_p4 = pnand %p489_p3, %p486_p2 }
  0x29   :  { %494 = shalt.err (!%p491_p4)
}
  0x2a   :  { %s495_s9 = scalar_lea.vmem %s42_s14, 2048  ;;  %p500_p6 = scmp.lt.s32.totalorder %s42_s14, %s42_s14 }
  0x2b   :  { %p496_p5 = scmp.ne.s32.totalorder %s42_s14, %s495_s9  ;;  %p501_p7 = scmp.lt.s32.totalorder %s495_s9, %s495_s9 }
  0x2d   :  { %p502_p8 = por %p501_p7, %p500_p6 }
  0x2f   :  { %p503_p9 = pnand %p502_p8, %p496_p5 }
  0x31   :  { %506 = shalt.err (!%p503_p9)
}
  0x32   :  { %47 = dma.hbm_to_vmem [thread:$0]  %s660_s2, 2048, %s42_s14, [#allocation6], %s536_s7, %s536_s7, %s537_s8  }
  0x33   :  { %529 = dma.done.wait [#allocation3], 128  }
  0x34   :  { %530 = vsyncadd [#allocation3], 4294967168 }
  0x35   :  { %531 = dma.done.wait [#allocation6], 4096  }
  0x36   :  { %532 = vsyncadd [#allocation6], 4294963200  ;;  %v540_v0 = vmov 0.0|0.0   ;;  %vm541_vm0 = vmmov 0   ;;  %v542_v1 = vmov 0.0   ;;  %v88_v2 = vld [vmem:[#allocation7] sm:$0xff] }
  0x37   :  { %384 = vmatprep.subr.bf16.mxu0 %v540_v0  ;;  %408 = vmatprep.subr.bf16.mxu1 %v540_v0  ;;  %v89_v3 = vld [vmem:[#allocation7 + $0x8] sm:$0xff]  ;;  %v72_v4 = vld [vmem:[#allocation5] sm:$0xff]  ;;  %v90_v7 = vld [vmem:[#allocation7 + $0x10] sm:$0xff]  ;;  %s543_s13 = smov [#allocation8]  }
  0x38   :  { %346 = vmatprep.mubr.msk.f32.mxu0 %vm541_vm0, %v542_v1  ;;  %381 = vmatprep.mubr.msk.f32.mxu1 %vm541_vm0, %v542_v1  ;;  %v385_v5 = vpack.c.bf16 %v89_v3, %v88_v2  ;;  %v73_v6 = vld [vmem:[#allocation5 + $0x8] sm:$0xff]  ;;  %v91_v8 = vld [vmem:[#allocation7 + $0x18] sm:$0xff]  ;;  %v74_v10 = vld [vmem:[#allocation5 + $0x10] sm:$0xff]  ;;  %s267_s14 = sshll.u32 %s543_s13, 4  ;;  %s268_s14 = int_to_ptr.vmem [resolvable:$true] %s267_s14 }
  0x39   :  { %v409_v9 = vpack.c.bf16 %v73_v6, %v72_v4  ;;  %v75_v11 = vld [vmem:[#allocation5 + $0x18] sm:$0xff]  ;;  %v388_v12 = vpack.c.bf16 %v91_v8, %v90_v7  ;;  %v92_v14 = vld [vmem:[#allocation7 + $0x20] sm:$0xff]  ;;  %v93_v15 = vld [vmem:[#allocation7 + $0x28] sm:$0xff]  ;;  %s507_s15 = scalar_lea.vmem %s268_s14, 128  ;;  %p512_p11 = scmp.lt.s32.totalorder %s268_s14, %s268_s14 }
  0x3a   :  { %386 = vmatpush3.bf16.msra.mxu0 %v385_v5  ;;  %v412_v13 = vpack.c.bf16 %v75_v11, %v74_v10  ;;  %v76_v16 = vld [vmem:[#allocation5 + $0x20] sm:$0xff]  ;;  %v77_v17 = vld [vmem:[#allocation5 + $0x28] sm:$0xff]  ;;  %v391_v18 = vpack.c.bf16 %v93_v15, %v92_v14  ;;  %v94_v20 = vld [vmem:[#allocation7 + $0x30] sm:$0xff]  ;;  %p508_p10 = scmp.ne.s32.totalorder %s268_s14, %s507_s15  ;;  %p513_p12 = scmp.lt.s32.totalorder %s507_s15, %s507_s15 }
  0x3b   :  { %410 = vmatpush3.bf16.msra.mxu1 %v409_v9  ;;  %387 = vmatprep.subr.bf16.mxu0 %v540_v0  ;;  %v415_v19 = vpack.c.bf16 %v77_v17, %v76_v16  ;;  %v95_v21 = vld [vmem:[#allocation7 + $0x38] sm:$0xff]  ;;  %v78_v22 = vld [vmem:[#allocation5 + $0x30] sm:$0xff]  ;;  %v96_v26 = vld [vmem:[#allocation7 + $0x40] sm:$0xff] }
  0x3c   :  { %411 = vmatprep.subr.bf16.mxu1 %v540_v0  ;;  %v79_v23 = vld [vmem:[#allocation5 + $0x38] sm:$0xff]  ;;  %v394_v24 = vpack.c.bf16 %v95_v21, %v94_v20  ;;  %v97_v27 = vld [vmem:[#allocation7 + $0x48] sm:$0xff]  ;;  %v80_v28 = vld [vmem:[#allocation5 + $0x40] sm:$0xff]  ;;  %p514_p13 = por %p513_p12, %p512_p11 }
  0x3d   :  { %v418_v25 = vpack.c.bf16 %v79_v23, %v78_v22  ;;  %v81_v29 = vld [vmem:[#allocation5 + $0x48] sm:$0xff]  ;;  %v397_v30 = vpack.c.bf16 %v97_v27, %v96_v26  ;;  %v98_v32 = vld [vmem:[#allocation7 + $0x50] sm:$0xff]  ;;  %v99_v33 = vld [vmem:[#allocation7 + $0x58] sm:$0xff] }
  0x3e   :  { %389 = vmatpush3.bf16.msra.mxu0 %v388_v12  ;;  %v421_v31 = vpack.c.bf16 %v81_v29, %v80_v28  ;;  %v82_v34 = vld [vmem:[#allocation5 + $0x50] sm:$0xff]  ;;  %v83_v35 = vld [vmem:[#allocation5 + $0x58] sm:$0xff]  ;;  %v400_v36 = vpack.c.bf16 %v99_v33, %v98_v32  ;;  %v100_v38 = vld [vmem:[#allocation7 + $0x60] sm:$0xff]  ;;  %p515_p0 = pnand %p514_p13, %p508_p10 }
  0x3f   :  { %413 = vmatpush3.bf16.msra.mxu1 %v412_v13  ;;  %390 = vmatprep.subr.bf16.mxu0 %v540_v0  ;;  %v424_v37 = vpack.c.bf16 %v83_v35, %v82_v34  ;;  %v101_v39 = vld [vmem:[#allocation7 + $0x68] sm:$0xff]  ;;  %v84_v40 = vld [vmem:[#allocation5 + $0x60] sm:$0xff]  ;;  %v102_v44 = vld [vmem:[#allocation7 + $0x70] sm:$0xff] }
  0x40   :  { %414 = vmatprep.subr.bf16.mxu1 %v540_v0  ;;  %v85_v41 = vld [vmem:[#allocation5 + $0x68] sm:$0xff]  ;;  %v403_v42 = vpack.c.bf16 %v101_v39, %v100_v38  ;;  %v103_v45 = vld [vmem:[#allocation7 + $0x78] sm:$0xff]  ;;  %v86_v46 = vld [vmem:[#allocation5 + $0x70] sm:$0xff] }
  0x41   :  { %v427_v43 = vpack.c.bf16 %v85_v41, %v84_v40  ;;  %v87_v47 = vld [vmem:[#allocation5 + $0x78] sm:$0xff]  ;;  %v406_v48 = vpack.c.bf16 %v103_v45, %v102_v44 }
  0x42   :  { %392 = vmatpush3.bf16.msra.mxu0 %v391_v18  ;;  %v63_v49 = vld [vmem:[#allocation2] sm:$0xff]  ;;  %v430_v51 = vpack.c.bf16 %v87_v47, %v86_v46 }
  0x43   :  { %416 = vmatpush3.bf16.msra.mxu1 %v415_v19  ;;  %393 = vmatprep.subr.bf16.mxu0 %v540_v0  ;;  %v277_v50 = vld [vmem:[%s661_s3] ss:$0 sm:$0xff] }
  0x44   :  { %417 = vmatprep.subr.bf16.mxu1 %v540_v0  ;;  %v71_v52 = vmul.f32 %v277_v50, %v63_v49  ;;  %v278_v53 = vld [vmem:[%s662_s4] ss:$0 sm:$0xff] }
  0x45   :  { %v279_v58 = vld [vmem:[%s663_s5] ss:$0 sm:$0xff] }
  0x46   :  { %395 = vmatpush3.bf16.msra.mxu0 %v394_v24 }
  0x47   :  { %419 = vmatpush3.bf16.msra.mxu1 %v418_v25  ;;  %396 = vmatprep.subr.bf16.mxu0 %v540_v0 }
  0x48   :  { %420 = vmatprep.subr.bf16.mxu1 %v540_v0 }
  0x4a   :  { %398 = vmatpush3.bf16.msra.mxu0 %v397_v30 }
  0x4b   :  { %422 = vmatpush3.bf16.msra.mxu1 %v421_v31  ;;  %399 = vmatprep.subr.bf16.mxu0 %v540_v0 }
  0x4c   :  { %423 = vmatprep.subr.bf16.mxu1 %v540_v0 }
  0x4e   :  { %401 = vmatpush3.bf16.msra.mxu0 %v400_v36 }
  0x4f   :  { %425 = vmatpush3.bf16.msra.mxu1 %v424_v37  ;;  %402 = vmatprep.subr.bf16.mxu0 %v540_v0 }
  0x50   :  { %426 = vmatprep.subr.bf16.mxu1 %v540_v0 }
  0x52   :  { %404 = vmatpush3.bf16.msra.mxu0 %v403_v42 }
  0x53   :  { %428 = vmatpush3.bf16.msra.mxu1 %v427_v43  ;;  %405 = vmatprep.subr.bf16.mxu0 %v540_v0 }
  0x54   :  { %429 = vmatprep.subr.bf16.mxu1 %v540_v0 }
  0x56   :  { %407 = vmatpush3.bf16.msra.mxu0 %v406_v48 }
  0x57   :  { %431 = vmatpush3.bf16.msra.mxu1 %v430_v51 }
  0x59   :  { %347 = vmatmul.mubr.f32.vlgmr.msra.gmra.mrb[0].mxu0 %v71_v52 }
  0x5a   :  { %382 = vmatmul.mubr.f32.vlgmr.msra.gmra.mrb[0].mxu1 %v63_v49 }
 0x12c   :  { %v170_v54 = vpop.f32.mrb[0].mxu0 }
 0x12d   :  { %v181_v55 = vmul.f32 %v278_v53, %v170_v54  ;;  %v348_v56 = vpop.f32.mrb[1].mxu0  ;;  %v248_v57 = vpop.f32.mrb[0].mxu1 }
 0x12e   :  { %v383_v59 = vpop.f32.mrb[1].mxu1 }
 0x12f   :  { %v249_v60 = vadd.f32 %v248_v57, %v181_v55 }
 0x131   :  { %v259_v61 = vadd.f32 %v279_v58, %v249_v60 }
 0x133   :  { %260 = vst [vmem:[#allocation8] sm:$0xff] %v259_v61 }
 0x134   :  { %518 = shalt.err (!%p515_p0)
}
 0x135   :  { %s519_s17 = scalar_lea.hbm %s664_s6, 128 }
 0x136   :  { %p520_p1 = scmp.ne.s32.totalorder %s664_s6, %s519_s17  ;;  %p523_p2 = scmp.lt.u32.totalorder %s519_s17, %s664_s6 }
 0x138   :  { %p525_p3 = pnand %p523_p2, %p520_p1 }
 0x13a   :  { %528 = shalt.err (!%p525_p3)
}
 0x13b   :  { %270 = dma.vmem_to_hbm [thread:$0]  %s268_s14, 128, %s664_s6, [#allocation4]  }
 0x13c   :  { %533 = dma.done.wait [#allocation4], 128  }
 0x13d   :  { %534 = vsyncadd [#allocation4], 4294967168 }
 0x13e   :  { %274 = vsyncpa [#allocation3], 1 }
 0x13f   :  { %275 = vsyncpa [#allocation6], 1 }
 0x140   :  { %276 = vsyncpa [#allocation4], 1 }

</bundles_post_ra>
